<compile_context>
chip_gen: v6e
topology: v6e:2x2x1
jax: 0.10.0
libtpu: 0.0.40
codegen_flags: <defaults>
</compile_context>

<pallas_src>
import functools

import jax
import jax.numpy as jnp
from jax import lax
from jax.experimental import pallas as pl
from jax.experimental.pallas import tpu as pltpu


# ---------------------------------------------------------------------------
# Pallas kernel
# ---------------------------------------------------------------------------
def _maxpool_kernel(x_ref, o_ref, *, k, w_in, wo, sub, n_sub):
    """k x k / stride-k max pool over a row-grouped slab.

    x_ref: (tm, k * w_in)  rows = (n, c, ho) output row groups; lanes = the k
           input H-rows of that group concatenated (each of width w_in = k*wo).
    o_ref: (tm, wo)
    """
    w_load = w_in - k + 1  # widest shifted chunk that stays inside a slab row

    # Stride-k lane-compaction matrix: sel[i, j] = 1 iff i == k*j (exactly one
    # 1 per column).  Generated in-kernel from iotas -> no HBM operand, no
    # second pipeline buffer wasted on an invariant input.
    i_idx = lax.broadcasted_iota(jnp.int32, (w_load, wo), 0)
    j_idx = lax.broadcasted_iota(jnp.int32, (w_load, wo), 1)
    sel = (i_idx == k * j_idx).astype(jnp.float32)

    def body(i_sub, carry):
        r0 = pl.multiple_of(i_sub * sub, sub)
        rows = pl.ds(r0, sub)

        # k*k pooling-window max: shifted lane chunks loaded straight from the
        # ref (VPU max).  z[:, j] = max_{r,s} x_row[r*w_in + j + s].
        z = None
        for r in range(k):          # H offset inside the window
            base = r * w_in
            for s in range(k):      # W offset inside the window
                chunk = x_ref[rows, base + s:base + s + w_load]
                z = chunk if z is None else jnp.maximum(z, chunk)

        # Keep every k-th lane: one exact 0/1 selection matmul on the MXU.
        out = jnp.dot(z.astype(jnp.float32), sel,
                      preferred_element_type=jnp.float32,
                      precision=lax.Precision.HIGHEST)
        o_ref[rows, :] = out.astype(o_ref.dtype)
        return carry

    lax.fori_loop(0, n_sub, body, 0, unroll=True)


# ---------------------------------------------------------------------------
# Tiling heuristic
# ---------------------------------------------------------------------------
def _pick_tiles(m, w_in, k, itemsize):
    """Returns (tm, sub, n_sub): grid row-tile, unrolled sub-chunk, chunks/tile."""
    if m <= 8:
        return m, m, 1

    # Sub-chunk rows: keep one (sub, ~w_in) f32 intermediate around <=32 vregs,
    # capped at 256 (MXU-friendly), floor 8.
    sub = 8
    while sub < 256 and (2 * sub) * w_in * 4 <= (128 << 10):
        sub *= 2
    sub = min(sub, (m // 8) * 8)

    # Grid steps: <= ~6 MiB of input per step (x2 double buffering + outputs
    # stays well inside 32 MiB scoped VMEM on v5e/v6e/v7x), >= 4 steps when
    # there is enough work (pipeline overlap), even count (v7x: 2 TensorCores).
    row_bytes = k * w_in * itemsize
    steps = -(-(m * row_bytes) // (6 << 20))
    if m >= 4 * sub:
        steps = max(steps, 4)
    steps = max(1, min(steps, m // sub))
    if steps > 1 and steps % 2:
        steps += 1

    rows_per_step = -(-m // steps)
    if steps > 1:
        tm = -(-rows_per_step // sub) * sub      # round up (provably <= m)
    else:
        tm = max(sub, (rows_per_step // sub) * sub)
    return tm, sub, tm // sub


# ---------------------------------------------------------------------------
# Wrapper
# ---------------------------------------------------------------------------
@functools.partial(jax.jit, static_argnames="kernel")
def maxpool_nchw(x, kernel=2):
    """MaxPool2d(kernel_size=kernel, stride=kernel) on an NCHW tensor."""
    k = int(kernel)
    if not jnp.issubdtype(x.dtype, jnp.floating):
        # TODO(synk): integer dtypes would need an exact non-MXU compaction path.
        raise NotImplementedError("maxpool_nchw supports float dtypes only")
    n, c, h, w = x.shape
    ho, wo = h // k, w // k
    if ho == 0 or wo == 0:
        raise ValueError("maxpool_nchw: spatial dims smaller than the kernel")

    # PyTorch floor semantics: drop trailing rows/cols that don't fill a window.
    x = x[:, :, :k * ho, :k * wo]
    w_in = k * wo
    m = n * c * ho

    # Free contiguous re-view: each slab row = the k input H-rows of one output
    # row group, concatenated along the lane axis. Read exactly once in-kernel.
    x2 = x.reshape(m, k * w_in)

    tm, sub, n_sub = _pick_tiles(m, w_in, k, x.dtype.itemsize)
    grid = (pl.cdiv(m, tm),)

    out = pl.pallas_call(
        functools.partial(_maxpool_kernel, k=k, w_in=w_in, wo=wo,
                          sub=sub, n_sub=n_sub),
        out_shape=jax.ShapeDtypeStruct((m, wo), x.dtype),
        grid=grid,
        in_specs=[pl.BlockSpec((tm, k * w_in), lambda i: (i, 0))],
        out_specs=pl.BlockSpec((tm, wo), lambda i: (i, 0)),
        compiler_params=pltpu.CompilerParams(
            dimension_semantics=("parallel",),
            vmem_limit_bytes=32 * 1024 * 1024),
    )(x2)

    return out.reshape(n, c, ho, wo)


# ---------------------------------------------------------------------------
# Self-test
# ---------------------------------------------------------------------------
if __name__ == "__main__":
    key = jax.random.PRNGKey(0)

    # Module-sized test: MP(kernel=2) on (2, 4, 16, 16).
    x = jax.random.normal(key, (2, 4, 16, 16), jnp.float32)
    out = jax.block_until_ready(maxpool_nchw(x, kernel=2))
    ref = lax.reduce_window(x, -jnp.inf, lax.max,
                            (1, 1, 2, 2), (1, 1, 2, 2), "VALID")
    assert out.shape == (2, 4, 8, 8), out.shape
    assert jnp.allclose(out, ref, rtol=1e-3, atol=1e-3)

    # Odd spatial dims: exercises the floor-crop and partial boundary block.
    x2 = jax.random.normal(jax.random.PRNGKey(1), (1, 3, 17, 18), jnp.float32)
    out2 = jax.block_until_ready(maxpool_nchw(x2, kernel=2))
    ref2 = lax.reduce_window(x2[:, :, :16, :18], -jnp.inf, lax.max,
                             (1, 1, 2, 2), (1, 1, 2, 2), "VALID")
    assert out2.shape == (1, 3, 8, 9), out2.shape
    assert jnp.allclose(out2, ref2, rtol=1e-3, atol=1e-3)

    print("KERNEL_OK")
</pallas_src>

<mosaic_0001>
module attributes {stable_mosaic.version = 11 : i64} {
  func.func @_maxpool_kernel(%arg0: i32, %arg1: memref<64x32xf32, #tpu.memory_space<vmem>>, %arg2: memref<64x8xf32, #tpu.memory_space<vmem>>) attributes {dimension_semantics = [#tpu.dimension_semantics<parallel>], iteration_bounds = array<i64: 1>, scalar_prefetch = 0 : i64, scratch_operands = 0 : i64, tpu.core_type = #tpu.core_type<tc>, window_params = [{transform_indices = @transform_0, window_bounds = array<i64: 64, 32>}, {transform_indices = @transform_1, window_bounds = array<i64: 64, 8>}]} {
    %0 = tpu.iota {dimensions = array<i32: 0>} : vector<15x8xi32>
    %1 = tpu.iota {dimensions = array<i32: 1>} : vector<15x8xi32>
    %c2_i32 = arith.constant 2 : i32
    %2 = vector.broadcast %c2_i32 : i32 to vector<15x8xi32>
    %3 = arith.muli %2, %1 : vector<15x8xi32>
    %4 = arith.cmpi eq, %0, %3 : vector<15x8xi32>
    %5 = arith.extui %4 : vector<15x8xi1> to vector<15x8xi32>
    %6 = arith.sitofp %5 : vector<15x8xi32> to vector<15x8xf32>
    %c0_i32 = arith.constant 0 : i32
    %c64_i32 = arith.constant 64 : i32
    %7 = arith.muli %c0_i32, %c64_i32 : i32
    %8 = tpu.assume_multiple %7, 64 : i32
    %9 = arith.index_cast %8 : i32 to index
    %c0 = arith.constant 0 : index
    %10 = vector.load %arg1[%9, %c0] : memref<64x32xf32, #tpu.memory_space<vmem>>, vector<64x15xf32>
    %11 = arith.index_cast %8 : i32 to index
    %c1 = arith.constant 1 : index
    %12 = vector.load %arg1[%11, %c1] : memref<64x32xf32, #tpu.memory_space<vmem>>, vector<64x15xf32>
    %13 = arith.maximumf %10, %12 : vector<64x15xf32>
    %14 = arith.index_cast %8 : i32 to index
    %c16 = arith.constant 16 : index
    %15 = vector.load %arg1[%14, %c16] : memref<64x32xf32, #tpu.memory_space<vmem>>, vector<64x15xf32>
    %16 = arith.maximumf %13, %15 : vector<64x15xf32>
    %17 = arith.index_cast %8 : i32 to index
    %c17 = arith.constant 17 : index
    %18 = vector.load %arg1[%17, %c17] : memref<64x32xf32, #tpu.memory_space<vmem>>, vector<64x15xf32>
    %19 = arith.maximumf %16, %18 : vector<64x15xf32>
    %cst = arith.constant dense<0.000000e+00> : vector<64x8xf32>
    %20 = tpu.matmul %19, %6, %cst {dimension_numbers = #tpu.dot_dimension_numbers<[1], [0], [0], [1], [0, 0, 1, 1], [], []>, precision = #tpu.contract_precision<fp32>} : vector<64x15xf32>, vector<15x8xf32>, vector<64x8xf32> -> vector<64x8xf32>
    %21 = arith.index_cast %8 : i32 to index
    %c0_0 = arith.constant 0 : index
    %22 = vector.load %arg2[%21, %c0_0] : memref<64x8xf32, #tpu.memory_space<vmem>>, vector<64x8xf32>
    tpu.vector_store %arg2[%21, %c0_0], %20 {strides = array<i32>} : memref<64x8xf32, #tpu.memory_space<vmem>>, vector<64x8xf32>,
    %c1_i32 = arith.constant 1 : i32
    return
  }
  func.func @transform_0(%arg0: i32) -> (i32, i32) {
    %c0_i32 = arith.constant 0 : i32
    %c0_i32_0 = arith.constant 0 : i32
    return %arg0, %c0_i32 : i32, i32
  }
  func.func @transform_1(%arg0: i32) -> (i32, i32) {
    %c0_i32 = arith.constant 0 : i32
    %c0_i32_0 = arith.constant 0 : i32
    return %arg0, %c0_i32 : i32, i32
  }
}

</mosaic_0001>

<bundles_post_ra>
// kernel: maxpool_nchw.1
= control target key start
LH: loop header
LB: loop body
LE: loop exit
PB: predicated region body
PF: predicated region fallthrough
CT: control target
= control target key end

     0   :  { %v9_v1 = vlaneseq  ;;  %s1141_s8 = smov 112   ;;  %s1142_s9 = smov 127   ;;  %s1400_s0 = inlined_call_operand.vmem [shape: f32[64,32], index: 0, kind: input, shape index: {}]   ;;  %s1401_s1 = inlined_call_operand.hbm [shape: f32[64,8], index: 1, kind: output, shape index: {}]  }
   0x1   :  { %v1162_v0 = vld [vmem:[%s1400_s0] sm:$0xff]  ;;  %v1171_v2 = vld [vmem:[%s1400_s0 + $0x8] sm:$0xff] }
   0x2   :  { %69 = vrot.lane.b32.xlu1 %v1162_v0, %s1141_s8  ;;  %37 = vrot.lane.b32.xlu0 %v1162_v0, %s1142_s9  ;;  %v10_v3 = vshrl.u32 %v9_v1, 7  ;;  %v13_v4 = vand.u32 127, %v9_v1 }
   0x3   :  { %6 = vsyncpa [#allocation3], 0  ;;  %vm158_vm0 = vcmask 1046528   ;;  %v1180_v7 = vld [vmem:[%s1400_s0 + $0x10] sm:$0xff]  ;;  %v1143_v9 = vmov 0.0   ;;  %s1144_s14 = smov 111  }
   0x4   :  { %v11_v5 = vadd.s32 8, %v10_v3  ;;  %v14_v6 = vmul.u32 2, %v13_v4  ;;  %v1205_v15 = vld [vmem:[%s1400_s0 + $0x18] sm:$0xff]  ;;  %v1145_v18 = vmov 1.0   ;;  %v1237_v23 = vld [vmem:[%s1400_s0 + $0x20] sm:$0xff]  ;;  %v1246_v24 = vld [vmem:[%s1400_s0 + $0x28] sm:$0xff] }
   0x5   :  { %v1261_v25 = vld [vmem:[%s1400_s0 + $0x30] sm:$0xff]  ;;  %v1270_v26 = vld [vmem:[%s1400_s0 + $0x38] sm:$0xff]  ;;  %vm133_vm3 = vcmask 121856   ;;  %vm922_vm4 = vcmask 64512   ;;  %s1146_s0 = smov [#allocation2]  }
   0x6   :  { %71 = vrot.lane.b32.xlu1 %v1171_v2, %s1141_s8  ;;  %39 = vrot.lane.b32.xlu0 %v1171_v2, %s1142_s9  ;;  %vm16_vm1 = vcmp.eq.s32.totalorder %v11_v5, %v14_v6  ;;  %vm1182_vm2 = vcmp.eq.s32.totalorder %v10_v3, %v14_v6  ;;  %s936_s25 = sshll.u32 %s1146_s0, 4  ;;  %s937_s25 = int_to_ptr.vmem [resolvable:$true] %s936_s25 }
   0x7   :  { %v1186_v10 = vsel %vm16_vm1, 1.0, %v1143_v9  ;;  %v947_v11 = vsel %vm1182_vm2, 1.0, %v1143_v9  ;;  %s1119_s26 = scalar_lea.vmem %s937_s25, 1024  ;;  %p1124_p1 = scmp.lt.s32.totalorder %s937_s25, %s937_s25 }
   0x8   :  { %v160_v12 = vsel %vm158_vm0, %v1186_v10, 0  ;;  %v1192_v13 = vsub.f32 %v947_v11, %v947_v11  ;;  %1015 = vmatprep.subr.msk.mxu0 %vm158_vm0, %v1186_v10  ;;  %p1120_p0 = scmp.ne.s32.totalorder %s937_s25, %s1119_s26  ;;  %p1125_p2 = scmp.lt.s32.totalorder %s1119_s26, %s1119_s26 }
   0x9   :  { %v1200_v14 = vsub.f32 %v160_v12, %v160_v12  ;;  %1016 = vmatpush3.msk.msra.mxu0 %vm158_vm0, %v1186_v10 }
   0xa   :  { %101 = vrot.lane.b32.xlu1 %v1162_v0, %s1144_s14  ;;  %41 = vrot.lane.b32.xlu0 %v1180_v7, %s1142_s9  ;;  %v1208_v16 = vand.u32 4294901760, %v1192_v13  ;;  %p1126_p3 = por %p1125_p2, %p1124_p1 }
   0xb   :  { %v1213_v17 = vand.u32 4294901760, %v1200_v14  ;;  %1017 = vmatprep.subr.msk.mxu0 %vm1182_vm2, %v1145_v18 }
   0xc   :  { %v348_v19 = vsub.f32 %v1192_v13, %v1208_v16  ;;  %1018 = vmatpush3.msk.msra.mxu0 %vm1182_vm2, %v1145_v18  ;;  %p1127_p4 = pnand %p1126_p3, %p1120_p0 }
   0xd   :  { %v341_v20 = vsub.f32 %v1200_v14, %v1213_v17  ;;  %1047 = vmatprep.subr.mxu0 %v1200_v14 }
   0xe   :  { %103 = vrot.lane.b32.xlu1 %v1171_v2, %s1144_s14  ;;  %43 = vrot.lane.b32.xlu0 %v1205_v15, %s1142_s9  ;;  %v349_v22 = vand.u32 4294901760, %v348_v19 }
   0xf   :  { %v342_v21 = vand.u32 4294901760, %v341_v20 }
  0x11   :  { %1031 = vmatprep.subr.mxu1 %v342_v21 }
  0x12   :  { %75 = vrot.lane.b32.xlu1 %v1205_v15, %s1141_s8  ;;  %73 = vrot.lane.b32.xlu0 %v1180_v7, %s1141_s8 }
  0x13   :  { %1032 = vmatpush3.msra.mxu1 %v342_v21 }
  0x14   :  { %1033 = vmatprep.subr.mxu1 %v349_v22 }
  0x15   :  { %1034 = vmatpush3.msra.mxu1 %v349_v22 }
  0x16   :  { %105 = vrot.lane.b32.xlu1 %v1180_v7, %s1144_s14  ;;  %45 = vrot.lane.b32.xlu0 %v1237_v23, %s1142_s9 }
  0x17   :  { %1063 = vmatprep.subr.msk.mxu1 %vm158_vm0, %v1186_v10 }
  0x1a   :  { %107 = vrot.lane.b32.xlu1 %v1205_v15, %s1144_s14  ;;  %47 = vrot.lane.b32.xlu0 %v1246_v24, %s1142_s9 }
  0x1e   :  { %79 = vrot.lane.b32.xlu1 %v1246_v24, %s1141_s8  ;;  %77 = vrot.lane.b32.xlu0 %v1237_v23, %s1141_s8 }
  0x22   :  { %109 = vrot.lane.b32.xlu1 %v1237_v23, %s1144_s14  ;;  %49 = vrot.lane.b32.xlu0 %v1261_v25, %s1142_s9 }
  0x26   :  { %111 = vrot.lane.b32.xlu1 %v1246_v24, %s1144_s14  ;;  %51 = vrot.lane.b32.xlu0 %v1270_v26, %s1142_s9 }
  0x2a   :  { %83 = vrot.lane.b32.xlu1 %v1270_v26, %s1141_s8  ;;  %81 = vrot.lane.b32.xlu0 %v1261_v25, %s1141_s8 }
  0x2e   :  { %115 = vrot.lane.b32.xlu1 %v1270_v26, %s1144_s14  ;;  %113 = vrot.lane.b32.xlu0 %v1261_v25, %s1144_s14 }
  0x74   :  { %v70_v27 = vpop.permute.xlu1 %69  ;;  %v38_v28 = vpop.permute.xlu0 %37 }
  0x75   :  { %v61_v29 = vmax.f32 %v1162_v0, %v38_v28 }
  0x77   :  { %v93_v33 = vmax.f32 %v61_v29, %v70_v27 }
  0x78   :  { %v72_v30 = vpop.permute.xlu1 %71  ;;  %v40_v31 = vpop.permute.xlu0 %39 }
  0x79   :  { %v62_v32 = vmax.f32 %v1171_v2, %v40_v31 }
  0x7b   :  { %v94_v38 = vmax.f32 %v62_v32, %v72_v30 }
  0x7c   :  { %v102_v34 = vpop.permute.xlu1 %101  ;;  %v42_v35 = vpop.permute.xlu0 %41 }
  0x7d   :  { %v125_v36 = vmax.f32 %v93_v33, %v102_v34  ;;  %v63_v49 = vmax.f32 %v1180_v7, %v42_v35 }
  0x7f   :  { %v135_v37 = vsel %vm133_vm3, %v125_v36, 0 }
  0x80   :  { %v1287_v39 = vand.u32 4294901760, %v135_v37  ;;  %v104_v40 = vpop.permute.xlu1 %103  ;;  %v44_v41 = vpop.permute.xlu0 %43 }
  0x81   :  { %v126_v42 = vmax.f32 %v94_v38, %v104_v40  ;;  %v64_v57 = vmax.f32 %v1205_v15, %v44_v41 }
  0x82   :  { %v1290_v43 = vsub.f32 %v135_v37, %v1287_v39  ;;  %1035 = vmatprep.mubr.f32.mxu1 %v1287_v39 }
  0x83   :  { %v138_v44 = vsel %vm133_vm3, %v126_v42, 0 }
  0x84   :  { %v1294_v45 = vand.u32 4294901760, %v138_v44  ;;  %v76_v46 = vpop.permute.xlu1 %75  ;;  %v74_v47 = vpop.permute.xlu0 %73  ;;  %v231_v48 = vand.u32 4294901760, %v1290_v43 }
  0x85   :  { %v95_v52 = vmax.f32 %v63_v49, %v74_v47  ;;  %v96_v60 = vmax.f32 %v64_v57, %v76_v46 }
  0x86   :  { %v1299_v50 = vsub.f32 %v138_v44, %v1294_v45  ;;  %1036 = vmatmul.mubr.f32.vlgmr.msra.gmra.mxu1 %v1294_v45  ;;  %v232_v51 = vsub.f32 %v1290_v43, %v231_v48 }
  0x87   :  { %1064 = vmatpush3.msk.msra.mxu1 %vm158_vm0, %v1186_v10 }
  0x88   :  { %v106_v53 = vpop.permute.xlu1 %105  ;;  %v46_v54 = vpop.permute.xlu0 %45  ;;  %v233_v55 = vand.u32 4294901760, %v232_v51  ;;  %v241_v56 = vand.u32 4294901760, %v1299_v50  ;;  %1065 = vmatprep.subr.msk.mxu1 %vm1182_vm2, %v1145_v18 }
  0x89   :  { %v127_v58 = vmax.f32 %v95_v52, %v106_v53  ;;  %1066 = vmatpush3.msk.msra.mxu1 %vm1182_vm2, %v1145_v18  ;;  %v65_v11 = vmax.f32 %v1237_v23, %v46_v54 }
  0x8a   :  { %1019 = vmatprep.mubr.f32.mxu0 %v233_v55  ;;  %v242_v59 = vsub.f32 %v1299_v50, %v241_v56  ;;  %1095 = vmatprep.subr.msk.mxu1 %vm158_vm0, %v1186_v10 }
  0x8b   :  { %v141_v61 = vsel %vm133_vm3, %v127_v58, 0 }
  0x8c   :  { %v1321_v62 = vand.u32 4294901760, %v141_v61  ;;  %v108_v63 = vpop.permute.xlu1 %107  ;;  %v48_v0 = vpop.permute.xlu0 %47  ;;  %v243_v1 = vand.u32 4294901760, %v242_v59 }
  0x8d   :  { %v128_v2 = vmax.f32 %v96_v60, %v108_v63  ;;  %v66_v27 = vmax.f32 %v1246_v24, %v48_v0 }
  0x8e   :  { %v1324_v3 = vsub.f32 %v141_v61, %v1321_v62  ;;  %1020 = vmatmul.mubr.f32.vlgmr.msra.gmra.mxu0 %v243_v1  ;;  %1038 = vmatprep.mubr.f32.mxu1 %v1321_v62 }
  0x8f   :  { %v144_v4 = vsel %vm133_vm3, %v128_v2, 0  ;;  %1048 = vmatpush3.msra.mxu0 %v1200_v14 }
  0x90   :  { %v1329_v5 = vand.u32 4294901760, %v144_v4  ;;  %v80_v6 = vpop.permute.xlu1 %79  ;;  %v78_v7 = vpop.permute.xlu0 %77  ;;  %v251_v9 = vand.u32 4294901760, %v1324_v3  ;;  %1049 = vmatprep.subr.mxu0 %v1192_v13 }
  0x91   :  { %1050 = vmatpush3.msra.mxu0 %v1192_v13  ;;  %v97_v14 = vmax.f32 %v65_v11, %v78_v7  ;;  %v98_v28 = vmax.f32 %v66_v27, %v80_v6 }
  0x92   :  { %v1336_v12 = vsub.f32 %v144_v4, %v1329_v5  ;;  %1039 = vmatmul.mubr.f32.gmra.mxu1 %v1329_v5  ;;  %v252_v15 = vsub.f32 %v1324_v3, %v251_v9  ;;  %1079 = vmatprep.subr.mxu0 %v1213_v17 }
  0x94   :  { %v110_v19 = vpop.permute.xlu1 %109  ;;  %v50_v20 = vpop.permute.xlu0 %49  ;;  %v253_v21 = vand.u32 4294901760, %v252_v15  ;;  %v261_v22 = vand.u32 4294901760, %v1336_v12 }
  0x95   :  { %v129_v23 = vmax.f32 %v97_v14, %v110_v19  ;;  %v67_v41 = vmax.f32 %v1261_v25, %v50_v20 }
  0x96   :  { %1022 = vmatprep.mubr.f32.mxu0 %v253_v21  ;;  %v262_v13 = vsub.f32 %v1336_v12, %v261_v22 }
  0x97   :  { %v147_v29 = vsel %vm133_vm3, %v129_v23, 0 }
  0x98   :  { %v1345_v30 = vand.u32 4294901760, %v147_v29  ;;  %v112_v31 = vpop.permute.xlu1 %111  ;;  %v52_v32 = vpop.permute.xlu0 %51  ;;  %v263_v33 = vand.u32 4294901760, %v262_v13 }
  0x99   :  { %v130_v34 = vmax.f32 %v98_v28, %v112_v31  ;;  %v68_v42 = vmax.f32 %v1270_v26, %v52_v32 }
  0x9a   :  { %v270_v35 = vsub.f32 %v147_v29, %v1345_v30  ;;  %1023 = vmatmul.mubr.f32.gmra.mxu0 %v263_v33  ;;  %1041 = vmatprep.mubr.f32.mxu1 %v1345_v30 }
  0x9b   :  { %v150_v24 = vsel %vm133_vm3, %v130_v34, 0 }
  0x9c   :  { %v1350_v36 = vand.u32 4294901760, %v150_v24  ;;  %v84_v37 = vpop.permute.xlu1 %83  ;;  %v82_v38 = vpop.permute.xlu0 %81  ;;  %v271_v40 = vand.u32 4294901760, %v270_v35 }
  0x9d   :  { %v100_v47 = vmax.f32 %v68_v42, %v84_v37  ;;  %v99_v49 = vmax.f32 %v67_v41, %v82_v38 }
  0x9e   :  { %v280_v44 = vsub.f32 %v150_v24, %v1350_v36  ;;  %1042 = vmatmul.mubr.f32.gmra.mxu1 %v1350_v36  ;;  %v272_v46 = vsub.f32 %v270_v35, %v271_v40 }
  0xa0   :  { %v116_v51 = vpop.permute.xlu1 %115  ;;  %v114_v52 = vpop.permute.xlu0 %113  ;;  %v273_v53 = vand.u32 4294901760, %v272_v46  ;;  %v281_v54 = vand.u32 4294901760, %v280_v44 }
  0xa1   :  { %v132_v55 = vmax.f32 %v100_v47, %v116_v51  ;;  %v131_v57 = vmax.f32 %v99_v49, %v114_v52 }
  0xa2   :  { %1025 = vmatprep.mubr.f32.mxu0 %v273_v53  ;;  %v282_v58 = vsub.f32 %v280_v44, %v281_v54 }
  0xa3   :  { %v156_v59 = vsel %vm133_vm3, %v132_v55, 0  ;;  %v153_v25 = vsel %vm133_vm3, %v131_v57, 0 }
  0xa4   :  { %v299_v26 = vand.u32 4294901760, %v156_v59  ;;  %v289_v60 = vand.u32 4294901760, %v153_v25  ;;  %v283_v61 = vand.u32 4294901760, %v282_v58 }
  0xa6   :  { %v300_v63 = vsub.f32 %v156_v59, %v299_v26  ;;  %v290_v0 = vsub.f32 %v153_v25, %v289_v60  ;;  %1026 = vmatmul.mubr.f32.gmra.mxu0 %v283_v61  ;;  %1044 = vmatprep.mubr.f32.mxu1 %v289_v60 }
  0xa7   :  { %1045 = vmatmul.mubr.f32.gmra.mxu1 %v299_v26 }
  0xa8   :  { %1067 = vmatprep.mubr.f32.mxu1 %v231_v48  ;;  %v291_v1 = vand.u32 4294901760, %v290_v0  ;;  %v301_v2 = vand.u32 4294901760, %v300_v63 }
  0xaa   :  { %v292_v4 = vsub.f32 %v290_v0, %v291_v1  ;;  %v302_v6 = vsub.f32 %v300_v63, %v301_v2 }
  0xab   :  { %1068 = vmatmul.mubr.f32.vlgmr.msra.gmra.mxu1 %v241_v56 }
  0xac   :  { %1070 = vmatprep.mubr.f32.mxu1 %v251_v9  ;;  %v293_v7 = vand.u32 4294901760, %v292_v4  ;;  %v303_v11 = vand.u32 4294901760, %v302_v6  ;;  %1096 = vmatpush3.msk.msra.mxu1 %vm158_vm0, %v1186_v10 }
  0xad   :  { %1097 = vmatprep.subr.msk.mxu1 %vm1182_vm2, %v1145_v18 }
  0xae   :  { %1028 = vmatprep.mubr.f32.mxu0 %v293_v7  ;;  %1098 = vmatpush3.msk.msra.mxu1 %vm1182_vm2, %v1145_v18 }
  0xaf   :  { %1029 = vmatmul.mubr.f32.gmra.mxu0 %v303_v11  ;;  %1071 = vmatmul.mubr.f32.gmra.mxu1 %v261_v22 }
  0xb0   :  { %1051 = vmatprep.mubr.f32.mxu0 %v1290_v43  ;;  %1073 = vmatprep.mubr.f32.mxu1 %v271_v40 }
  0xb3   :  { %1052 = vmatmul.mubr.f32.vlgmr.msra.gmra.mxu0 %v1299_v50  ;;  %1074 = vmatmul.mubr.f32.gmra.mxu1 %v281_v54 }
  0xb4   :  { %1080 = vmatpush3.msra.mxu0 %v1213_v17  ;;  %1054 = vmatprep.mubr.f32.mxu0 %v1324_v3 }
  0xb5   :  { %1076 = vmatprep.mubr.f32.mxu1 %v291_v1  ;;  %1081 = vmatprep.subr.mxu0 %v1208_v16 }
  0xb6   :  { %1082 = vmatpush3.msra.mxu0 %v1208_v16 }
  0xb7   :  { %1055 = vmatmul.mubr.f32.gmra.mxu0 %v1336_v12  ;;  %1077 = vmatmul.mubr.f32.gmra.mxu1 %v301_v2 }
  0xb8   :  { %1057 = vmatprep.mubr.f32.mxu0 %v270_v35  ;;  %1099 = vmatprep.mubr.f32.mxu1 %v1287_v39 }
  0xbb   :  { %1058 = vmatmul.mubr.f32.gmra.mxu0 %v280_v44  ;;  %1100 = vmatmul.mubr.f32.vlgmr.msra.gmra.mxu1 %v1294_v45 }
  0xbc   :  { %1060 = vmatprep.mubr.f32.mxu0 %v290_v0  ;;  %1102 = vmatprep.mubr.f32.mxu1 %v1321_v62 }
  0xbf   :  { %1061 = vmatmul.mubr.f32.gmra.mxu0 %v300_v63  ;;  %1103 = vmatmul.mubr.f32.gmra.mxu1 %v1329_v5 }
  0xc0   :  { %1083 = vmatprep.mubr.f32.mxu0 %v1287_v39  ;;  %1105 = vmatprep.mubr.f32.mxu1 %v1345_v30 }
  0xc3   :  { %1084 = vmatmul.mubr.f32.vlgmr.msra.gmra.mxu0 %v1294_v45  ;;  %1106 = vmatmul.mubr.f32.gmra.mxu1 %v1350_v36 }
  0xc4   :  { %1086 = vmatprep.mubr.f32.mxu0 %v1321_v62  ;;  %1108 = vmatprep.mubr.f32.mxu1 %v289_v60 }
  0xc7   :  { %1087 = vmatmul.mubr.f32.gmra.mxu0 %v1329_v5  ;;  %1109 = vmatmul.mubr.f32.gmra.mxu1 %v299_v26 }
  0xc8   :  { %1089 = vmatprep.mubr.f32.mxu0 %v1345_v30 }
  0xcb   :  { %1090 = vmatmul.mubr.f32.gmra.mxu0 %v1350_v36 }
  0xcc   :  { %1092 = vmatprep.mubr.f32.mxu0 %v289_v60 }
  0xcf   :  { %1093 = vmatmul.mubr.f32.gmra.mxu0 %v299_v26 }
 0x146   :  { %v1037_v8 = vpop.f32.mrf.mxu1 }
 0x148   :  { %v386_v10 = vpop.f32.mrf.mxu1 }
 0x14e   :  { %v1021_v17 = vpop.f32.mrf.mxu0 }
 0x14f   :  { %v393_v33 = vadd.f32 %v1037_v8, %v1021_v17 }
 0x150   :  { %v235_v39 = vpop.f32.mrf.mxu0 }
 0x151   :  { %v387_v24 = vadd.f32 %v386_v10, %v235_v39 }
 0x152   :  { %v1040_v16 = vpop.f32.mrf.mxu1 }
 0x154   :  { %v398_v18 = vpop.f32.mrf.mxu1 }
 0x15a   :  { %v1024_v45 = vpop.f32.mrf.mxu0 }
 0x15b   :  { %v405_v40 = vadd.f32 %v1040_v16, %v1024_v45 }
 0x15c   :  { %v255_v50 = vpop.f32.mrf.mxu0 }
 0x15d   :  { %v399_v44 = vadd.f32 %v398_v18, %v255_v50 }
 0x15e   :  { %v1043_v43 = vpop.f32.mrf.mxu1 }
 0x160   :  { %v410_v48 = vpop.f32.mrf.mxu1 }
 0x166   :  { %v1027_v62 = vpop.f32.mrf.mxu0 }
 0x167   :  { %v1046_v56 = vpop.f32.mrf.mxu1  ;;  %v417_v52 = vadd.f32 %v1043_v43, %v1027_v62 }
 0x168   :  { %v275_v9 = vpop.f32.mrf.mxu0 }
 0x169   :  { %v422_v3 = vpop.f32.mrf.mxu1  ;;  %v411_v57 = vadd.f32 %v410_v48, %v275_v9 }
 0x16b   :  { %v1069_v5 = vpop.f32.mrf.mxu1 }
 0x16d   :  { %v628_v12 = vpop.f32.mrf.mxu1 }
 0x16f   :  { %v1030_v15 = vpop.f32.mrf.mxu0  ;;  %v1072_v14 = vpop.f32.mrf.mxu1 }
 0x170   :  { %v429_v61 = vadd.f32 %v1046_v56, %v1030_v15 }
 0x171   :  { %v295_v19 = vpop.f32.mrf.mxu0  ;;  %v644_v20 = vpop.f32.mrf.mxu1 }
 0x172   :  { %v423_v7 = vadd.f32 %v422_v3, %v295_v19 }
 0x173   :  { %v1053_v21 = vpop.f32.mrf.mxu0  ;;  %v1075_v22 = vpop.f32.mrf.mxu1 }
 0x174   :  { %v512_v36 = vadd.f32 %v1053_v21, %v393_v33 }
 0x175   :  { %v504_v27 = vpop.f32.mrf.mxu0  ;;  %v660_v23 = vpop.f32.mrf.mxu1 }
 0x176   :  { %v505_v41 = vadd.f32 %v504_v27, %v387_v24  ;;  %v637_v47 = vadd.f32 %v1069_v5, %v512_v36 }
 0x177   :  { %v1056_v13 = vpop.f32.mrf.mxu0  ;;  %v1078_v28 = vpop.f32.mrf.mxu1 }
 0x178   :  { %v526_v46 = vadd.f32 %v1056_v13, %v405_v40  ;;  %v629_v55 = vadd.f32 %v628_v12, %v505_v41 }
 0x179   :  { %v518_v29 = vpop.f32.mrf.mxu0  ;;  %v676_v30 = vpop.f32.mrf.mxu1 }
 0x17a   :  { %v519_v53 = vadd.f32 %v518_v29, %v399_v44  ;;  %v653_v60 = vadd.f32 %v1072_v14, %v526_v46 }
 0x17b   :  { %v1059_v31 = vpop.f32.mrf.mxu0  ;;  %v1101_v32 = vpop.f32.mrf.mxu1 }
 0x17c   :  { %v540_v59 = vadd.f32 %v1059_v31, %v417_v52  ;;  %v645_v6 = vadd.f32 %v644_v20, %v519_v53 }
 0x17d   :  { %v532_v34 = vpop.f32.mrf.mxu0  ;;  %v876_v35 = vpop.f32.mrf.mxu1 }
 0x17e   :  { %v533_v1 = vadd.f32 %v532_v34, %v411_v57  ;;  %v669_v17 = vadd.f32 %v1075_v22, %v540_v59 }
 0x17f   :  { %v1062_v37 = vpop.f32.mrf.mxu0  ;;  %v1104_v38 = vpop.f32.mrf.mxu1 }
 0x180   :  { %v554_v8 = vadd.f32 %v1062_v37, %v429_v61  ;;  %v661_v50 = vadd.f32 %v660_v23, %v533_v1 }
 0x181   :  { %v546_v42 = vpop.f32.mrf.mxu0  ;;  %v888_v49 = vpop.f32.mrf.mxu1 }
 0x182   :  { %v547_v43 = vadd.f32 %v546_v42, %v423_v7  ;;  %v685_v5 = vadd.f32 %v1078_v28, %v554_v8 }
 0x183   :  { %v1085_v51 = vpop.f32.mrf.mxu0  ;;  %v1107_v63 = vpop.f32.mrf.mxu1 }
 0x184   :  { %v768_v54 = vadd.f32 %v1085_v51, %v637_v47  ;;  %v677_v19 = vadd.f32 %v676_v30, %v547_v43 }
 0x185   :  { %v761_v58 = vpop.f32.mrf.mxu0  ;;  %v900_v18 = vpop.f32.mrf.mxu1 }
 0x186   :  { %v883_v25 = vadd.f32 %v1101_v32, %v768_v54  ;;  %v762_v26 = vadd.f32 %v761_v58, %v629_v55 }
 0x187   :  { %v1088_v0 = vpop.f32.mrf.mxu0  ;;  %v1110_v9 = vpop.f32.mrf.mxu1 }
 0x188   :  { %924 = vst.msk [vmem:[#allocation2 + $0x8] sm:$0xff] %vm922_vm4, %v883_v25  ;;  %v877_v2 = vadd.f32 %v876_v35, %v762_v26  ;;  %v780_v4 = vadd.f32 %v1088_v0, %v653_v60 }
 0x189   :  { %v773_v11 = vpop.f32.mrf.mxu0  ;;  %v912_v27 = vpop.f32.mrf.mxu1 }
 0x18a   :  { %923 = vst.msk [vmem:[#allocation2] sm:$0xff] %vm922_vm4, %v877_v2  ;;  %v895_v10 = vadd.f32 %v1104_v38, %v780_v4  ;;  %v774_v16 = vadd.f32 %v773_v11, %v645_v6 }
 0x18b   :  { %v1091_v39 = vpop.f32.mrf.mxu0 }
 0x18c   :  { %926 = vst.msk [vmem:[#allocation2 + $0x18] sm:$0xff] %vm922_vm4, %v895_v10  ;;  %v889_v45 = vadd.f32 %v888_v49, %v774_v16  ;;  %v792_v48 = vadd.f32 %v1091_v39, %v669_v17 }
 0x18d   :  { %v785_v56 = vpop.f32.mrf.mxu0 }
 0x18e   :  { %925 = vst.msk [vmem:[#allocation2 + $0x10] sm:$0xff] %vm922_vm4, %v889_v45  ;;  %v907_v62 = vadd.f32 %v1107_v63, %v792_v48  ;;  %v786_v3 = vadd.f32 %v785_v56, %v661_v50 }
 0x18f   :  { %v1094_v12 = vpop.f32.mrf.mxu0 }
 0x190   :  { %928 = vst.msk [vmem:[#allocation2 + $0x28] sm:$0xff] %vm922_vm4, %v907_v62  ;;  %v901_v15 = vadd.f32 %v900_v18, %v786_v3  ;;  %v804_v14 = vadd.f32 %v1094_v12, %v685_v5 }
 0x191   :  { %v797_v20 = vpop.f32.mrf.mxu0 }
 0x192   :  { %927 = vst.msk [vmem:[#allocation2 + $0x20] sm:$0xff] %vm922_vm4, %v901_v15  ;;  %v919_v21 = vadd.f32 %v1110_v9, %v804_v14  ;;  %v798_v22 = vadd.f32 %v797_v20, %v677_v19 }
 0x194   :  { %930 = vst.msk [vmem:[#allocation2 + $0x38] sm:$0xff] %vm922_vm4, %v919_v21  ;;  %v913_v23 = vadd.f32 %v912_v27, %v798_v22 }
 0x196   :  { %929 = vst.msk [vmem:[#allocation2 + $0x30] sm:$0xff] %vm922_vm4, %v913_v23 }
 0x197   :  { %1130 = shalt.err (!%p1127_p4)
}
 0x198   :  { %s1147_s27 = smov 128   ;;  %s1148_s28 = smov 8  }
 0x199   :  { %942 = dma.vmem_to_hbm [thread:$0]  %s937_s25, 1024, %s1401_s1, [#allocation3], %s1147_s27, %s1147_s27, %s1148_s28  }
 0x19a   :  { %1139 = dma.done.wait [#allocation3], 1024  }
 0x19b   :  { %1140 = vsyncadd [#allocation3], 4294966272 }
 0x19c   :  { %946 = vsyncpa [#allocation3], 1 }

</bundles_post_ra>
